<compile_context>
chip_gen: v7x
topology: tpu7x:2x2x1
jax: 0.10.0
libtpu: 0.0.40
codegen_flags: <defaults>
</compile_context>

<pallas_src>
import jax
import jax.numpy as jnp
from jax import lax
from jax.experimental import pallas as pl
from jax.experimental.pallas import tpu as pltpu

_EPS = 1e-5
_VMEM_LIMIT = 32 * 1024 * 1024
_FUSED_VMEM_BUDGET = 6 * 1024 * 1024   # conservative: whole working set must fit VMEM


# ----------------------------------------------------------------------------
# channel-mix helpers (1x1 conv == per-batch channel matmul)
# ----------------------------------------------------------------------------
def _channel_mix(w, x):
    """(Co, Ci) @ (Ci, L) -> (Co, L).  VPU broadcast-FMAs for tiny Ci, else MXU."""
    co, ci = w.shape
    if ci <= 16:
        acc = w[:, 0:1] * x[0:1, :]
        for c in range(1, ci):
            acc = acc + w[:, c:c + 1] * x[c:c + 1, :]
        return acc
    return jnp.dot(w, x, preferred_element_type=jnp.float32)


def _batched_channel_mix(w, x):
    """(Co, Ci), (N, Ci, L) -> (N, Co, L) with the batch axis kept in place."""
    n, ci, _ = x.shape
    co = w.shape[0]
    if ci <= 16:
        acc = x[:, 0:1, :] * w[None, :, 0:1]
        for c in range(1, ci):
            acc = acc + x[:, c:c + 1, :] * w[None, :, c:c + 1]
        return acc
    return jnp.stack(
        [jnp.dot(w, x[b], preferred_element_type=jnp.float32) for b in range(n)],
        axis=0)


# ----------------------------------------------------------------------------
# fused single-kernel path (small working sets)
# ----------------------------------------------------------------------------
def _feedforward_fused(x, w1, g1, b1, w2, g2, b2, count):
    N, Cin, HW = x.shape
    Cmid = w1.shape[0]
    Cout = w2.shape[0]
    inv_count = 1.0 / count

    def kernel(x_ref, w1_ref, g1_ref, b1_ref, w2_ref, g2_ref, b2_ref, o_ref):
        def bn_relu(v, g, b):
            # per-channel stats over (batch, spatial); two-pass variance.
            mu = jnp.sum(jnp.sum(v, axis=2, keepdims=True), axis=0,
                         keepdims=True) * inv_count
            d = v - mu
            var = jnp.sum(jnp.sum(d * d, axis=2, keepdims=True), axis=0,
                          keepdims=True) * inv_count
            scale = g * lax.rsqrt(var + _EPS)
            shift = b - mu * scale
            return jnp.maximum(v * scale + shift, 0.0)

        xv = x_ref[...]                                   # (N, Cin, HW)
        h = _batched_channel_mix(w1_ref[...], xv)         # (N, Cmid, HW)
        hn = bn_relu(h, g1_ref[...], b1_ref[...])
        y = _batched_channel_mix(w2_ref[...], hn)         # (N, Cout, HW)
        o_ref[...] = bn_relu(y, g2_ref[...], b2_ref[...])

    return pl.pallas_call(
        kernel,
        out_shape=jax.ShapeDtypeStruct((N, Cout, HW), jnp.float32),
        compiler_params=pltpu.CompilerParams(vmem_limit_bytes=_VMEM_LIMIT),
    )(x, w1,
      g1.reshape(1, Cmid, 1), b1.reshape(1, Cmid, 1),
      w2,
      g2.reshape(1, Cout, 1), b2.reshape(1, Cout, 1))


# ----------------------------------------------------------------------------
# tiled three-pass path (large working sets)
# ----------------------------------------------------------------------------
def _pick_tile_hw(hw):
    """Largest lane-dense tile (<=8192, multiple of 128) that divides hw."""
    if hw % 128 != 0:
        return hw  # fall back to the full (untiled) spatial axis
    for cand in (8192, 4096, 2048, 1024, 512, 256, 128):
        if hw % cand == 0:
            return cand
    return hw


def _conv_stats_kernel(x_ref, w_ref, sum_ref, sq_ref):
    """Stats-only pass: accumulate per-(batch, channel, lane) sum / sumsq of h=W@x."""
    @pl.when(pl.program_id(1) == 0)
    def _():
        sum_ref[...] = jnp.zeros_like(sum_ref)
        sq_ref[...] = jnp.zeros_like(sq_ref)

    h = _channel_mix(w_ref[...], x_ref[...])
    sum_ref[...] += h
    sq_ref[...] += h * h


def _bn_conv_stats_kernel(x_ref, w1_ref, scale_ref, shift_ref, w2_ref,
                          y_ref, sum_ref, sq_ref):
    """Recompute h=W1@x, bn1+relu, y=W2@hn; write y and accumulate its stats."""
    @pl.when(pl.program_id(1) == 0)
    def _():
        sum_ref[...] = jnp.zeros_like(sum_ref)
        sq_ref[...] = jnp.zeros_like(sq_ref)

    h = _channel_mix(w1_ref[...], x_ref[...])
    hn = jnp.maximum(h * scale_ref[...] + shift_ref[...], 0.0)
    y = _channel_mix(w2_ref[...], hn)
    y_ref[...] = y
    sum_ref[...] += y
    sq_ref[...] += y * y


def _bn_relu_kernel(y_ref, scale_ref, shift_ref, o_ref):
    o_ref[...] = jnp.maximum(y_ref[...] * scale_ref[...] + shift_ref[...], 0.0)


def _finalize_bn(psum, psq, gamma, beta, count):
    """Fold BN into per-channel scale/shift: out = h * scale + shift."""
    s = jnp.sum(psum, axis=(0, 2))
    q = jnp.sum(psq, axis=(0, 2))
    mu = s / count
    var = jnp.maximum(q / count - mu * mu, 0.0)   # biased var (training-mode BN)
    scale = gamma * lax.rsqrt(var + _EPS)
    shift = beta - mu * scale
    c = gamma.shape[0]
    return scale.reshape(c, 1), shift.reshape(c, 1)


def _feedforward_tiled(x, w1, g1, b1, w2, g2, b2, count):
    N, Cin, HW = x.shape
    Cmid = w1.shape[0]
    Cout = w2.shape[0]
    thw = _pick_tile_hw(HW)
    grid = (N, HW // thw)

    def tile_spec(c):
        return pl.BlockSpec((None, c, thw), lambda n, t: (n, 0, t))

    def acc_spec(c):   # per-batch resident accumulator (race-free across cores)
        return pl.BlockSpec((None, c, thw), lambda n, t: (n, 0, 0))

    def full_spec(shape):
        return pl.BlockSpec(shape, lambda n, t: (0,) * len(shape))

    params_acc = pltpu.CompilerParams(
        dimension_semantics=("parallel", "arbitrary"),
        vmem_limit_bytes=_VMEM_LIMIT)
    params_par = pltpu.CompilerParams(
        dimension_semantics=("parallel", "parallel"),
        vmem_limit_bytes=_VMEM_LIMIT)

    # ---- pass 1: stats of h = W1 @ x (h never written to HBM) ---------------
    s1, q1 = pl.pallas_call(
        _conv_stats_kernel,
        out_shape=(jax.ShapeDtypeStruct((N, Cmid, thw), jnp.float32),
                   jax.ShapeDtypeStruct((N, Cmid, thw), jnp.float32)),
        grid=grid,
        in_specs=[tile_spec(Cin), full_spec((Cmid, Cin))],
        out_specs=(acc_spec(Cmid), acc_spec(Cmid)),
        compiler_params=params_acc,
    )(x, w1)
    scale1, shift1 = _finalize_bn(s1, q1, g1, b1, count)

    # ---- pass 2: recompute h, bn1+relu, conv2, stats of y -------------------
    y, s2, q2 = pl.pallas_call(
        _bn_conv_stats_kernel,
        out_shape=(jax.ShapeDtypeStruct((N, Cout, HW), jnp.float32),
                   jax.ShapeDtypeStruct((N, Cout, thw), jnp.float32),
                   jax.ShapeDtypeStruct((N, Cout, thw), jnp.float32)),
        grid=grid,
        in_specs=[tile_spec(Cin), full_spec((Cmid, Cin)),
                  full_spec((Cmid, 1)), full_spec((Cmid, 1)),
                  full_spec((Cout, Cmid))],
        out_specs=(tile_spec(Cout), acc_spec(Cout), acc_spec(Cout)),
        compiler_params=params_acc,
    )(x, w1, scale1, shift1, w2)
    scale2, shift2 = _finalize_bn(s2, q2, g2, b2, count)

    # ---- pass 3: bn2 + relu (no accumulator -> fully parallel) --------------
    return pl.pallas_call(
        _bn_relu_kernel,
        out_shape=jax.ShapeDtypeStruct((N, Cout, HW), jnp.float32),
        grid=grid,
        in_specs=[tile_spec(Cout), full_spec((Cout, 1)), full_spec((Cout, 1))],
        out_specs=tile_spec(Cout),
        compiler_params=params_par,
    )(y, scale2, shift2)


# ----------------------------------------------------------------------------
# public entry point
# ----------------------------------------------------------------------------
def feedforward_pallas(x_nchw, w1, g1, b1, w2, g2, b2):
    """x_nchw: (N, Cin, H, W) f32.  w1: (Cmid, Cin), w2: (Cout, Cmid) (torch 1x1-conv layout)."""
    N, Cin, H, W = x_nchw.shape
    Cmid = w1.shape[0]
    Cout = w2.shape[0]
    HW = H * W
    count = float(N * HW)

    x = x_nchw.reshape(N, Cin, HW)   # free reshape, spatial axis on lanes

    # rough working-set estimate for the fused single-kernel path
    fused_bytes = 4 * N * HW * (Cin + 3 * Cmid + 3 * Cout)
    if fused_bytes <= _FUSED_VMEM_BUDGET:
        out = _feedforward_fused(x, w1, g1, b1, w2, g2, b2, count)
    else:
        out = _feedforward_tiled(x, w1, g1, b1, w2, g2, b2, count)
    return out.reshape(N, Cout, H, W)


# ----------------------------------------------------------------------------
# pure-JAX reference (PyTorch training-mode forward)
# ----------------------------------------------------------------------------
def _reference(x, w1, g1, b1, w2, g2, b2):
    def block(xx, w, g, b):
        hh = jnp.einsum('oc,nchw->nohw', w, xx)
        mu = jnp.mean(hh, axis=(0, 2, 3), keepdims=True)
        var = jnp.mean((hh - mu) ** 2, axis=(0, 2, 3), keepdims=True)
        hn = (hh - mu) / jnp.sqrt(var + _EPS)
        hn = hn * g.reshape(1, -1, 1, 1) + b.reshape(1, -1, 1, 1)
        return jnp.maximum(hn, 0.0)

    return block(block(x, w1, g1, b1), w2, g2, b2)


if __name__ == "__main__":
    # Small shapes consistent with the module: inplace=4, outplace=8.
    N, Cin, Cout, H, W = 2, 4, 8, 16, 16

    key = jax.random.PRNGKey(0)
    k_x, k_w1, k_w2, k_g1, k_b1, k_g2, k_b2 = jax.random.split(key, 7)

    x = jax.random.normal(k_x, (N, Cin, H, W), dtype=jnp.float32)

    # conv weights in PyTorch layout (Cout, Cin) (kernel_size=1 squeezed)
    w1 = jax.random.normal(k_w1, (Cout, Cin), dtype=jnp.float32) / jnp.sqrt(Cin)
    w2 = jax.random.normal(k_w2, (Cout, Cout), dtype=jnp.float32) / jnp.sqrt(Cout)

    # BatchNorm affine params (non-trivial to exercise the math)
    g1 = 1.0 + 0.1 * jax.random.normal(k_g1, (Cout,), dtype=jnp.float32)
    b1 = 0.1 * jax.random.normal(k_b1, (Cout,), dtype=jnp.float32)
    g2 = 1.0 + 0.1 * jax.random.normal(k_g2, (Cout,), dtype=jnp.float32)
    b2 = 0.1 * jax.random.normal(k_b2, (Cout,), dtype=jnp.float32)

    out = jax.block_until_ready(feedforward_pallas(x, w1, g1, b1, w2, g2, b2))

    ref = _reference(x, w1, g1, b1, w2, g2, b2)
    assert out.shape == (N, Cout, H, W)
    assert jnp.allclose(out, ref, atol=1e-3, rtol=1e-3), float(
        jnp.max(jnp.abs(out - ref)))

    print("KERNEL_OK")
</pallas_src>

<mosaic_0001>
module attributes {stable_mosaic.version = 11 : i64} {
  func.func @kernel(%arg0: memref<2x4x256xf32, #tpu.memory_space<vmem>>, %arg1: memref<8x4xf32, #tpu.memory_space<vmem>>, %arg2: memref<1x8x1xf32, #tpu.memory_space<vmem>>, %arg3: memref<1x8x1xf32, #tpu.memory_space<vmem>>, %arg4: memref<8x8xf32, #tpu.memory_space<vmem>>, %arg5: memref<1x8x1xf32, #tpu.memory_space<vmem>>, %arg6: memref<1x8x1xf32, #tpu.memory_space<vmem>>, %arg7: memref<2x8x256xf32, #tpu.memory_space<vmem>>) attributes {dimension_semantics = [], scalar_prefetch = 0 : i64, scratch_operands = 0 : i64, tpu.core_type = #tpu.core_type<tc>} {
    %c0 = arith.constant 0 : index
    %c0_0 = arith.constant 0 : index
    %c0_1 = arith.constant 0 : index
    %0 = vector.load %arg0[%c0, %c0_0, %c0_1] : memref<2x4x256xf32, #tpu.memory_space<vmem>>, vector<2x4x256xf32>
    %c0_2 = arith.constant 0 : index
    %c0_3 = arith.constant 0 : index
    %1 = vector.load %arg1[%c0_2, %c0_3] : memref<8x4xf32, #tpu.memory_space<vmem>>, vector<8x4xf32>
    %2 = vector.extract_strided_slice %0 {offsets = [0, 0, 0], sizes = [2, 1, 256], strides = [1, 1, 1]} : vector<2x4x256xf32> to vector<2x1x256xf32>
    %3 = vector.extract_strided_slice %1 {offsets = [0, 0], sizes = [8, 1], strides = [1, 1]} : vector<8x4xf32> to vector<8x1xf32>
    %4 = vector.shape_cast %3 : vector<8x1xf32> to vector<1x8x1xf32>
    %5 = vector.broadcast %2 : vector<2x1x256xf32> to vector<2x8x256xf32>
    %6 = vector.broadcast %4 : vector<1x8x1xf32> to vector<2x8x256xf32>
    %7 = arith.mulf %5, %6 : vector<2x8x256xf32>
    %8 = vector.extract_strided_slice %0 {offsets = [0, 1, 0], sizes = [2, 1, 256], strides = [1, 1, 1]} : vector<2x4x256xf32> to vector<2x1x256xf32>
    %9 = vector.extract_strided_slice %1 {offsets = [0, 1], sizes = [8, 1], strides = [1, 1]} : vector<8x4xf32> to vector<8x1xf32>
    %10 = vector.shape_cast %9 : vector<8x1xf32> to vector<1x8x1xf32>
    %11 = vector.broadcast %8 : vector<2x1x256xf32> to vector<2x8x256xf32>
    %12 = vector.broadcast %10 : vector<1x8x1xf32> to vector<2x8x256xf32>
    %13 = arith.mulf %11, %12 : vector<2x8x256xf32>
    %14 = arith.addf %7, %13 : vector<2x8x256xf32>
    %15 = vector.extract_strided_slice %0 {offsets = [0, 2, 0], sizes = [2, 1, 256], strides = [1, 1, 1]} : vector<2x4x256xf32> to vector<2x1x256xf32>
    %16 = vector.extract_strided_slice %1 {offsets = [0, 2], sizes = [8, 1], strides = [1, 1]} : vector<8x4xf32> to vector<8x1xf32>
    %17 = vector.shape_cast %16 : vector<8x1xf32> to vector<1x8x1xf32>
    %18 = vector.broadcast %15 : vector<2x1x256xf32> to vector<2x8x256xf32>
    %19 = vector.broadcast %17 : vector<1x8x1xf32> to vector<2x8x256xf32>
    %20 = arith.mulf %18, %19 : vector<2x8x256xf32>
    %21 = arith.addf %14, %20 : vector<2x8x256xf32>
    %22 = vector.extract_strided_slice %0 {offsets = [0, 3, 0], sizes = [2, 1, 256], strides = [1, 1, 1]} : vector<2x4x256xf32> to vector<2x1x256xf32>
    %23 = vector.extract_strided_slice %1 {offsets = [0, 3], sizes = [8, 1], strides = [1, 1]} : vector<8x4xf32> to vector<8x1xf32>
    %24 = vector.shape_cast %23 : vector<8x1xf32> to vector<1x8x1xf32>
    %25 = vector.broadcast %22 : vector<2x1x256xf32> to vector<2x8x256xf32>
    %26 = vector.broadcast %24 : vector<1x8x1xf32> to vector<2x8x256xf32>
    %27 = arith.mulf %25, %26 : vector<2x8x256xf32>
    %28 = arith.addf %21, %27 : vector<2x8x256xf32>
    %c0_4 = arith.constant 0 : index
    %c0_5 = arith.constant 0 : index
    %c0_6 = arith.constant 0 : index
    %29 = vector.load %arg2[%c0_4, %c0_5, %c0_6] : memref<1x8x1xf32, #tpu.memory_space<vmem>>, vector<1x8x1xf32>
    %c0_7 = arith.constant 0 : index
    %c0_8 = arith.constant 0 : index
    %c0_9 = arith.constant 0 : index
    %30 = vector.load %arg3[%c0_7, %c0_8, %c0_9] : memref<1x8x1xf32, #tpu.memory_space<vmem>>, vector<1x8x1xf32>
    %cst = arith.constant dense<0.000000e+00> : vector<2x8xf32>
    %31 = vector.multi_reduction <add>, %28, %cst [2] : vector<2x8x256xf32> to vector<2x8xf32>
    %32 = vector.shape_cast %31 : vector<2x8xf32> to vector<2x8x1xf32>
    %cst_10 = arith.constant dense<0.000000e+00> : vector<8x1xf32>
    %33 = vector.multi_reduction <add>, %32, %cst_10 [0] : vector<2x8x1xf32> to vector<8x1xf32>
    %34 = vector.shape_cast %33 : vector<8x1xf32> to vector<1x8x1xf32>
    %cst_11 = arith.constant 0.001953125 : f32
    %35 = vector.broadcast %cst_11 : f32 to vector<1x8x1xf32>
    %36 = arith.mulf %34, %35 : vector<1x8x1xf32>
    %37 = vector.broadcast %36 : vector<1x8x1xf32> to vector<2x8x256xf32>
    %38 = arith.subf %28, %37 : vector<2x8x256xf32>
    %39 = arith.mulf %38, %38 : vector<2x8x256xf32>
    %cst_12 = arith.constant dense<0.000000e+00> : vector<2x8xf32>
    %40 = vector.multi_reduction <add>, %39, %cst_12 [2] : vector<2x8x256xf32> to vector<2x8xf32>
    %41 = vector.shape_cast %40 : vector<2x8xf32> to vector<2x8x1xf32>
    %cst_13 = arith.constant dense<0.000000e+00> : vector<8x1xf32>
    %42 = vector.multi_reduction <add>, %41, %cst_13 [0] : vector<2x8x1xf32> to vector<8x1xf32>
    %43 = vector.shape_cast %42 : vector<8x1xf32> to vector<1x8x1xf32>
    %cst_14 = arith.constant 0.001953125 : f32
    %44 = vector.broadcast %cst_14 : f32 to vector<1x8x1xf32>
    %45 = arith.mulf %43, %44 : vector<1x8x1xf32>
    %cst_15 = arith.constant 9.99999974E-6 : f32
    %46 = vector.broadcast %cst_15 : f32 to vector<1x8x1xf32>
    %47 = arith.addf %45, %46 : vector<1x8x1xf32>
    %48 = math.rsqrt %47 : vector<1x8x1xf32>
    %49 = arith.mulf %29, %48 : vector<1x8x1xf32>
    %50 = arith.mulf %36, %49 : vector<1x8x1xf32>
    %51 = arith.subf %30, %50 : vector<1x8x1xf32>
    %52 = vector.broadcast %49 : vector<1x8x1xf32> to vector<2x8x256xf32>
    %53 = arith.mulf %28, %52 : vector<2x8x256xf32>
    %54 = vector.broadcast %51 : vector<1x8x1xf32> to vector<2x8x256xf32>
    %55 = arith.addf %53, %54 : vector<2x8x256xf32>
    %cst_16 = arith.constant 0.000000e+00 : f32
    %56 = vector.broadcast %cst_16 : f32 to vector<2x8x256xf32>
    %57 = arith.maximumf %55, %56 : vector<2x8x256xf32>
    %c0_17 = arith.constant 0 : index
    %c0_18 = arith.constant 0 : index
    %58 = vector.load %arg4[%c0_17, %c0_18] : memref<8x8xf32, #tpu.memory_space<vmem>>, vector<8x8xf32>
    %59 = vector.extract_strided_slice %57 {offsets = [0, 0, 0], sizes = [2, 1, 256], strides = [1, 1, 1]} : vector<2x8x256xf32> to vector<2x1x256xf32>
    %60 = vector.extract_strided_slice %58 {offsets = [0, 0], sizes = [8, 1], strides = [1, 1]} : vector<8x8xf32> to vector<8x1xf32>
    %61 = vector.shape_cast %60 : vector<8x1xf32> to vector<1x8x1xf32>
    %62 = vector.broadcast %59 : vector<2x1x256xf32> to vector<2x8x256xf32>
    %63 = vector.broadcast %61 : vector<1x8x1xf32> to vector<2x8x256xf32>
    %64 = arith.mulf %62, %63 : vector<2x8x256xf32>
    %65 = vector.extract_strided_slice %57 {offsets = [0, 1, 0], sizes = [2, 1, 256], strides = [1, 1, 1]} : vector<2x8x256xf32> to vector<2x1x256xf32>
    %66 = vector.extract_strided_slice %58 {offsets = [0, 1], sizes = [8, 1], strides = [1, 1]} : vector<8x8xf32> to vector<8x1xf32>
    %67 = vector.shape_cast %66 : vector<8x1xf32> to vector<1x8x1xf32>
    %68 = vector.broadcast %65 : vector<2x1x256xf32> to vector<2x8x256xf32>
    %69 = vector.broadcast %67 : vector<1x8x1xf32> to vector<2x8x256xf32>
    %70 = arith.mulf %68, %69 : vector<2x8x256xf32>
    %71 = arith.addf %64, %70 : vector<2x8x256xf32>
    %72 = vector.extract_strided_slice %57 {offsets = [0, 2, 0], sizes = [2, 1, 256], strides = [1, 1, 1]} : vector<2x8x256xf32> to vector<2x1x256xf32>
    %73 = vector.extract_strided_slice %58 {offsets = [0, 2], sizes = [8, 1], strides = [1, 1]} : vector<8x8xf32> to vector<8x1xf32>
    %74 = vector.shape_cast %73 : vector<8x1xf32> to vector<1x8x1xf32>
    %75 = vector.broadcast %72 : vector<2x1x256xf32> to vector<2x8x256xf32>
    %76 = vector.broadcast %74 : vector<1x8x1xf32> to vector<2x8x256xf32>
    %77 = arith.mulf %75, %76 : vector<2x8x256xf32>
    %78 = arith.addf %71, %77 : vector<2x8x256xf32>
    %79 = vector.extract_strided_slice %57 {offsets = [0, 3, 0], sizes = [2, 1, 256], strides = [1, 1, 1]} : vector<2x8x256xf32> to vector<2x1x256xf32>
    %80 = vector.extract_strided_slice %58 {offsets = [0, 3], sizes = [8, 1], strides = [1, 1]} : vector<8x8xf32> to vector<8x1xf32>
    %81 = vector.shape_cast %80 : vector<8x1xf32> to vector<1x8x1xf32>
    %82 = vector.broadcast %79 : vector<2x1x256xf32> to vector<2x8x256xf32>
    %83 = vector.broadcast %81 : vector<1x8x1xf32> to vector<2x8x256xf32>
    %84 = arith.mulf %82, %83 : vector<2x8x256xf32>
    %85 = arith.addf %78, %84 : vector<2x8x256xf32>
    %86 = vector.extract_strided_slice %57 {offsets = [0, 4, 0], sizes = [2, 1, 256], strides = [1, 1, 1]} : vector<2x8x256xf32> to vector<2x1x256xf32>
    %87 = vector.extract_strided_slice %58 {offsets = [0, 4], sizes = [8, 1], strides = [1, 1]} : vector<8x8xf32> to vector<8x1xf32>
    %88 = vector.shape_cast %87 : vector<8x1xf32> to vector<1x8x1xf32>
    %89 = vector.broadcast %86 : vector<2x1x256xf32> to vector<2x8x256xf32>
    %90 = vector.broadcast %88 : vector<1x8x1xf32> to vector<2x8x256xf32>
    %91 = arith.mulf %89, %90 : vector<2x8x256xf32>
    %92 = arith.addf %85, %91 : vector<2x8x256xf32>
    %93 = vector.extract_strided_slice %57 {offsets = [0, 5, 0], sizes = [2, 1, 256], strides = [1, 1, 1]} : vector<2x8x256xf32> to vector<2x1x256xf32>
    %94 = vector.extract_strided_slice %58 {offsets = [0, 5], sizes = [8, 1], strides = [1, 1]} : vector<8x8xf32> to vector<8x1xf32>
    %95 = vector.shape_cast %94 : vector<8x1xf32> to vector<1x8x1xf32>
    %96 = vector.broadcast %93 : vector<2x1x256xf32> to vector<2x8x256xf32>
    %97 = vector.broadcast %95 : vector<1x8x1xf32> to vector<2x8x256xf32>
    %98 = arith.mulf %96, %97 : vector<2x8x256xf32>
    %99 = arith.addf %92, %98 : vector<2x8x256xf32>
    %100 = vector.extract_strided_slice %57 {offsets = [0, 6, 0], sizes = [2, 1, 256], strides = [1, 1, 1]} : vector<2x8x256xf32> to vector<2x1x256xf32>
    %101 = vector.extract_strided_slice %58 {offsets = [0, 6], sizes = [8, 1], strides = [1, 1]} : vector<8x8xf32> to vector<8x1xf32>
    %102 = vector.shape_cast %101 : vector<8x1xf32> to vector<1x8x1xf32>
    %103 = vector.broadcast %100 : vector<2x1x256xf32> to vector<2x8x256xf32>
    %104 = vector.broadcast %102 : vector<1x8x1xf32> to vector<2x8x256xf32>
    %105 = arith.mulf %103, %104 : vector<2x8x256xf32>
    %106 = arith.addf %99, %105 : vector<2x8x256xf32>
    %107 = vector.extract_strided_slice %57 {offsets = [0, 7, 0], sizes = [2, 1, 256], strides = [1, 1, 1]} : vector<2x8x256xf32> to vector<2x1x256xf32>
    %108 = vector.extract_strided_slice %58 {offsets = [0, 7], sizes = [8, 1], strides = [1, 1]} : vector<8x8xf32> to vector<8x1xf32>
    %109 = vector.shape_cast %108 : vector<8x1xf32> to vector<1x8x1xf32>
    %110 = vector.broadcast %107 : vector<2x1x256xf32> to vector<2x8x256xf32>
    %111 = vector.broadcast %109 : vector<1x8x1xf32> to vector<2x8x256xf32>
    %112 = arith.mulf %110, %111 : vector<2x8x256xf32>
    %113 = arith.addf %106, %112 : vector<2x8x256xf32>
    %c0_19 = arith.constant 0 : index
    %c0_20 = arith.constant 0 : index
    %c0_21 = arith.constant 0 : index
    %114 = vector.load %arg5[%c0_19, %c0_20, %c0_21] : memref<1x8x1xf32, #tpu.memory_space<vmem>>, vector<1x8x1xf32>
    %c0_22 = arith.constant 0 : index
    %c0_23 = arith.constant 0 : index
    %c0_24 = arith.constant 0 : index
    %115 = vector.load %arg6[%c0_22, %c0_23, %c0_24] : memref<1x8x1xf32, #tpu.memory_space<vmem>>, vector<1x8x1xf32>
    %cst_25 = arith.constant dense<0.000000e+00> : vector<2x8xf32>
    %116 = vector.multi_reduction <add>, %113, %cst_25 [2] : vector<2x8x256xf32> to vector<2x8xf32>
    %117 = vector.shape_cast %116 : vector<2x8xf32> to vector<2x8x1xf32>
    %cst_26 = arith.constant dense<0.000000e+00> : vector<8x1xf32>
    %118 = vector.multi_reduction <add>, %117, %cst_26 [0] : vector<2x8x1xf32> to vector<8x1xf32>
    %119 = vector.shape_cast %118 : vector<8x1xf32> to vector<1x8x1xf32>
    %cst_27 = arith.constant 0.001953125 : f32
    %120 = vector.broadcast %cst_27 : f32 to vector<1x8x1xf32>
    %121 = arith.mulf %119, %120 : vector<1x8x1xf32>
    %122 = vector.broadcast %121 : vector<1x8x1xf32> to vector<2x8x256xf32>
    %123 = arith.subf %113, %122 : vector<2x8x256xf32>
    %124 = arith.mulf %123, %123 : vector<2x8x256xf32>
    %cst_28 = arith.constant dense<0.000000e+00> : vector<2x8xf32>
    %125 = vector.multi_reduction <add>, %124, %cst_28 [2] : vector<2x8x256xf32> to vector<2x8xf32>
    %126 = vector.shape_cast %125 : vector<2x8xf32> to vector<2x8x1xf32>
    %cst_29 = arith.constant dense<0.000000e+00> : vector<8x1xf32>
    %127 = vector.multi_reduction <add>, %126, %cst_29 [0] : vector<2x8x1xf32> to vector<8x1xf32>
    %128 = vector.shape_cast %127 : vector<8x1xf32> to vector<1x8x1xf32>
    %cst_30 = arith.constant 0.001953125 : f32
    %129 = vector.broadcast %cst_30 : f32 to vector<1x8x1xf32>
    %130 = arith.mulf %128, %129 : vector<1x8x1xf32>
    %cst_31 = arith.constant 9.99999974E-6 : f32
    %131 = vector.broadcast %cst_31 : f32 to vector<1x8x1xf32>
    %132 = arith.addf %130, %131 : vector<1x8x1xf32>
    %133 = math.rsqrt %132 : vector<1x8x1xf32>
    %134 = arith.mulf %114, %133 : vector<1x8x1xf32>
    %135 = arith.mulf %121, %134 : vector<1x8x1xf32>
    %136 = arith.subf %115, %135 : vector<1x8x1xf32>
    %137 = vector.broadcast %134 : vector<1x8x1xf32> to vector<2x8x256xf32>
    %138 = arith.mulf %113, %137 : vector<2x8x256xf32>
    %139 = vector.broadcast %136 : vector<1x8x1xf32> to vector<2x8x256xf32>
    %140 = arith.addf %138, %139 : vector<2x8x256xf32>
    %cst_32 = arith.constant 0.000000e+00 : f32
    %141 = vector.broadcast %cst_32 : f32 to vector<2x8x256xf32>
    %142 = arith.maximumf %140, %141 : vector<2x8x256xf32>
    %c0_33 = arith.constant 0 : index
    %c0_34 = arith.constant 0 : index
    %c0_35 = arith.constant 0 : index
    %143 = vector.load %arg7[%c0_33, %c0_34, %c0_35] : memref<2x8x256xf32, #tpu.memory_space<vmem>>, vector<2x8x256xf32>
    tpu.vector_store %arg7[%c0_33, %c0_34, %c0_35], %142 {strides = array<i32>} : memref<2x8x256xf32, #tpu.memory_space<vmem>>, vector<2x8x256xf32>,
    return
  }
}

</mosaic_0001>

<bundles_post_ra>
// kernel: tpu_custom_call.1
= control target key start
LH: loop header
LB: loop body
LE: loop exit
PB: predicated region body
PF: predicated region fallthrough
CT: control target
= control target key end

     0   :  { %v624_v1 = vmov 0   ;;  %v625_v2 = vmov 2   ;;  %s863_s0 = inlined_call_operand.vmem [shape: f32[2,4,256], index: 0, kind: input, shape index: {}]   ;;  %s864_s1 = inlined_call_operand.vmem [shape: f32[8,4], index: 1, kind: input, shape index: {}]   ;;  %s865_s2 = inlined_call_operand.vmem [shape: f32[1,8,1], index: 2, kind: input, shape index: {}]   ;;  %s866_s3 = inlined_call_operand.vmem [shape: f32[1,8,1], index: 3, kind: input, shape index: {}]   ;;  %s867_s4 = inlined_call_operand.vmem [shape: f32[8,8], index: 4, kind: input, shape index: {}]   ;;  %s868_s5 = inlined_call_operand.vmem [shape: f32[1,8,1], index: 5, kind: input, shape index: {}]   ;;  %s869_s6 = inlined_call_operand.vmem [shape: f32[1,8,1], index: 6, kind: input, shape index: {}]   ;;  %s870_s7 = inlined_call_operand.hbm [shape: f32[2,8,256], index: 7, kind: output, shape index: {}]  }
   0x1   :  { %v29_v0 = vld [vmem:[%s864_s1] sm:$0xff]  ;;  %580 = vset.pattern.permute.xlu0 %v624_v1  ;;  %582 = vset.pattern.permute.xlu1 %v625_v2 }
   0x2   :  { %12 = vsyncpa [#allocation3], 0  ;;  %70 = vperm.xlu0 %580, %v29_v0   ;;  %162 = vperm.xlu1 %582, %v29_v0   ;;  %v626_v3 = vmov 1   ;;  %v627_v4 = vmov 3   ;;  %v32_v5 = vlaneseq  ;;  %v27_v9 = vld [vmem:[%s863_s0] sm:$0xff]  ;;  %v28_v10 = vld [vmem:[%s863_s0 + $0x8] sm:$0xff] }
   0x3   :  { %s632_s12 = smov [#allocation2]  }
   0x4   :  { %v33_v6 = vshrl.u32 %v32_v5, 7  ;;  %s558_s13 = sshll.u32 %s632_s12, 4  ;;  %s559_s13 = int_to_ptr.vmem [resolvable:$true] %s558_s13 }
   0x5   :  { %p605_p1 = scmp.lt.s32.totalorder %s559_s13, %s559_s13 }
   0x6   :  { %581 = vset.pattern.permute.xlu0 %v626_v3  ;;  %583 = vset.pattern.permute.xlu1 %v627_v4  ;;  %v684_v7 = vsub.s32 0, %v33_v6  ;;  %v686_v8 = vsub.s32 4, %v33_v6  ;;  %v694_v11 = vsub.s32 2, %v33_v6  ;;  %v696_v12 = vsub.s32 6, %v33_v6 }
   0x7   :  { %114 = vperm.xlu0 %581, %v29_v0   ;;  %210 = vperm.xlu1 %583, %v29_v0   ;;  %v698_v13 = vsub.s32 1, %v33_v6  ;;  %v700_v14 = vsub.s32 5, %v33_v6  ;;  %v702_v15 = vsub.s32 3, %v33_v6  ;;  %v704_v16 = vsub.s32 7, %v33_v6 }
   0x8   :  { %v35_v17 = vrot.slane %v27_v9, %v684_v7  ;;  %v39_v18 = vrot.slane %v27_v9, %v686_v8  ;;  %v43_v19 = vrot.slane %v28_v10, %v684_v7  ;;  %v47_v20 = vrot.slane %v28_v10, %v686_v8 }
   0x9   :  { %v128_v21 = vrot.slane %v27_v9, %v694_v11  ;;  %v132_v22 = vrot.slane %v27_v9, %v696_v12  ;;  %v136_v23 = vrot.slane %v28_v10, %v694_v11  ;;  %v140_v24 = vrot.slane %v28_v10, %v696_v12 }
   0xa   :  { %v80_v25 = vrot.slane %v27_v9, %v698_v13  ;;  %v84_v26 = vrot.slane %v27_v9, %v700_v14  ;;  %v88_v27 = vrot.slane %v28_v10, %v698_v13  ;;  %v92_v28 = vrot.slane %v28_v10, %v700_v14 }
   0xb   :  { %585 = vset.pattern.permute.xlu1 %v624_v1  ;;  %584 = vset.pattern.permute.xlu0 %v624_v1  ;;  %v176_v29 = vrot.slane %v27_v9, %v702_v15  ;;  %v180_v30 = vrot.slane %v27_v9, %v704_v16  ;;  %v184_v31 = vrot.slane %v28_v10, %v702_v15 }
   0xc   :  { %v188_v32 = vrot.slane %v28_v10, %v704_v16  ;;  %v55_v34 = vrot.slane %v35_v17, %v684_v7  ;;  %v59_v35 = vrot.slane %v39_v18, %v684_v7  ;;  %v63_v36 = vrot.slane %v43_v19, %v684_v7 }
   0xd   :  { %v67_v37 = vrot.slane %v47_v20, %v684_v7  ;;  %v148_v39 = vrot.slane %v128_v21, %v694_v11  ;;  %v152_v40 = vrot.slane %v132_v22, %v694_v11  ;;  %v156_v41 = vrot.slane %v136_v23, %v694_v11 }
   0xe   :  { %v160_v42 = vrot.slane %v140_v24, %v694_v11  ;;  %v100_v43 = vrot.slane %v80_v25, %v698_v13  ;;  %v104_v44 = vrot.slane %v84_v26, %v698_v13  ;;  %v108_v45 = vrot.slane %v88_v27, %v698_v13 }
   0xf   :  { %v112_v46 = vrot.slane %v92_v28, %v698_v13  ;;  %v196_v47 = vrot.slane %v176_v29, %v702_v15  ;;  %v200_v48 = vrot.slane %v180_v30, %v702_v15  ;;  %v204_v49 = vrot.slane %v184_v31, %v702_v15 }
  0x10   :  { %v208_v50 = vrot.slane %v188_v32, %v702_v15 }
  0x81   :  { %v71_v33 = vpop.permute.xlu0 %70  ;;  %v163_v38 = vpop.permute.xlu1 %162 }
  0x82   :  { %v73_v51 = vmul.f32 %v71_v33, %v55_v34  ;;  %v74_v52 = vmul.f32 %v71_v33, %v59_v35  ;;  %v75_v53 = vmul.f32 %v71_v33, %v63_v36  ;;  %v76_v54 = vmul.f32 %v71_v33, %v67_v37 }
  0x83   :  { %v165_v55 = vmul.f32 %v163_v38, %v148_v39  ;;  %v166_v56 = vmul.f32 %v163_v38, %v152_v40  ;;  %v167_v57 = vmul.f32 %v163_v38, %v156_v41  ;;  %v168_v58 = vmul.f32 %v163_v38, %v160_v42 }
  0x86   :  { %v115_v59 = vpop.permute.xlu0 %114  ;;  %v211_v60 = vpop.permute.xlu1 %210 }
  0x87   :  { %v117_v61 = vmul.f32 %v115_v59, %v100_v43  ;;  %v118_v62 = vmul.f32 %v115_v59, %v104_v44  ;;  %v119_v63 = vmul.f32 %v115_v59, %v108_v45  ;;  %v120_v0 = vmul.f32 %v115_v59, %v112_v46  ;;  %v274_v45 = vld [vmem:[%s867_s4] sm:$0xff] }
  0x88   :  { %v213_v5 = vmul.f32 %v211_v60, %v196_v47  ;;  %v214_v6 = vmul.f32 %v211_v60, %v200_v48  ;;  %v215_v9 = vmul.f32 %v211_v60, %v204_v49  ;;  %v216_v10 = vmul.f32 %v211_v60, %v208_v50 }
  0x89   :  { %v121_v17 = vadd.f32 %v117_v61, %v73_v51  ;;  %v122_v18 = vadd.f32 %v118_v62, %v74_v52  ;;  %v123_v19 = vadd.f32 %v119_v63, %v75_v53  ;;  %v124_v20 = vadd.f32 %v120_v0, %v76_v54  ;;  %v221_v51 = vld [vmem:[%s865_s2] sm:$0xff] }
  0x8b   :  { %v171_v21 = vadd.f32 %v167_v57, %v123_v19  ;;  %v172_v22 = vadd.f32 %v168_v58, %v124_v20  ;;  %v169_v23 = vadd.f32 %v165_v55, %v121_v17  ;;  %v170_v24 = vadd.f32 %v166_v56, %v122_v18 }
  0x8c   :  { %v628_v55 = vmov 7   ;;  %v629_v56 = vmov 4   ;;  %v630_v57 = vmov 5   ;;  %v631_v58 = vmov 6  }
  0x8d   :  { %v738_v25 = vadd.f32 %v215_v9, %v171_v21  ;;  %v740_v26 = vadd.f32 %v216_v10, %v172_v22  ;;  %v742_v27 = vadd.f32 %v213_v5, %v169_v23  ;;  %v744_v28 = vadd.f32 %v214_v6, %v170_v24 }
  0x8f   :  { %v226_v29 = vadd.f32 %v740_v26, %v738_v25  ;;  %v223_v30 = vadd.f32 %v744_v28, %v742_v27 }
  0x91   :  { %227 = vadd.xlane.f32.xlu0 %v226_v29  ;;  %224 = vadd.xlane.f32.xlu1 %v223_v30 }
 0x11e   :  { %v228_v31 = vpop.xlane.xlu0 %227  ;;  %v225_v32 = vpop.xlane.xlu1 %224 }
 0x11f   :  { %v229_v33 = vadd.f32 %v228_v31, %v225_v32 }
 0x121   :  { %v230_v34 = vmul.f32 0.001953125, %v229_v33 }
 0x123   :  { %v233_v35 = vsub.f32 %v738_v25, %v230_v34  ;;  %v234_v36 = vsub.f32 %v740_v26, %v230_v34  ;;  %v231_v37 = vsub.f32 %v742_v27, %v230_v34  ;;  %v232_v38 = vsub.f32 %v744_v28, %v230_v34 }
 0x125   :  { %v237_v39 = vmul.f32 %v233_v35, %v233_v35  ;;  %v238_v40 = vmul.f32 %v234_v36, %v234_v36  ;;  %v235_v41 = vmul.f32 %v231_v37, %v231_v37  ;;  %v236_v42 = vmul.f32 %v232_v38, %v232_v38 }
 0x127   :  { %v242_v43 = vadd.f32 %v238_v40, %v237_v39  ;;  %v239_v44 = vadd.f32 %v236_v42, %v235_v41 }
 0x129   :  { %243 = vadd.xlane.f32.xlu1 %v242_v43  ;;  %240 = vadd.xlane.f32.xlu0 %v239_v44 }
 0x13a   :  { %293 = vperm.xlu1 %585, %v274_v45  }
 0x13e   :  { %586 = vset.pattern.permute.xlu1 %v626_v3  ;;  %v222_v3 = vld [vmem:[%s866_s3] sm:$0xff] }
 0x13f   :  { %317 = vperm.xlu1 %586, %v274_v45  }
 0x143   :  { %587 = vset.pattern.permute.xlu1 %v625_v2 }
 0x144   :  { %345 = vperm.xlu1 %587, %v274_v45  }
 0x148   :  { %588 = vset.pattern.permute.xlu1 %v624_v1 }
 0x1b6   :  { %v244_v46 = vpop.xlane.xlu1 %243  ;;  %v241_v47 = vpop.xlane.xlu0 %240 }
 0x1b7   :  { %v245_v48 = vadd.f32 %v244_v46, %v241_v47 }
 0x1b9   :  { %v246_v49 = vmul.f32 0.001953125, %v245_v48 }
 0x1ba   :  { %v294_v59 = vpop.permute.xlu1 %293 }
 0x1bb   :  { %v247_v50 = vadd.f32 1e-05, %v246_v49 }
 0x1bd   :  { %596 = vrsqrt.f32 %v247_v50 }
 0x1be   :  { %v318_v60 = vpop.permute.xlu1 %317 }
 0x1c3   :  { %v346_v61 = vpop.permute.xlu1 %345 }
 0x1c7   :  { %v597_v52 = vpop.eup %596 }
 0x1c8   :  { %v249_v53 = vmul.f32 %v597_v52, %v221_v51 }
 0x1ca   :  { %254 = vperm.xlu0 %584, %v249_v53   ;;  %v250_v2 = vmul.f32 %v249_v53, %v230_v34 }
 0x1cc   :  { %v251_v54 = vsub.f32 %v222_v3, %v250_v2 }
 0x1ce   :  { %263 = vperm.xlu1 %588, %v251_v54   ;;  %593 = vset.pattern.permute.xlu0 %v628_v55 }
 0x1cf   :  { %485 = vperm.xlu0 %593, %v274_v45  }
 0x1d2   :  { %589 = vset.pattern.permute.xlu1 %v627_v4 }
 0x1d3   :  { %373 = vperm.xlu1 %589, %v274_v45   ;;  %595 = vset.pattern.permute.xlu0 %v624_v1 }
 0x1d7   :  { %590 = vset.pattern.permute.xlu1 %v629_v56 }
 0x1d8   :  { %401 = vperm.xlu1 %590, %v274_v45  }
 0x1dc   :  { %591 = vset.pattern.permute.xlu1 %v630_v57 }
 0x1dd   :  { %429 = vperm.xlu1 %591, %v274_v45  }
 0x1e1   :  { %592 = vset.pattern.permute.xlu1 %v631_v58 }
 0x1e2   :  { %457 = vperm.xlu1 %592, %v274_v45  }
 0x1e6   :  { %594 = vset.pattern.permute.xlu1 %v624_v1 }
 0x249   :  { %v255_v62 = vpop.permute.xlu0 %254 }
 0x24a   :  { %v257_v4 = vmul.f32 %v255_v62, %v742_v27  ;;  %v258_v63 = vmul.f32 %v255_v62, %v744_v28  ;;  %v259_v0 = vmul.f32 %v255_v62, %v738_v25  ;;  %v260_v5 = vmul.f32 %v255_v62, %v740_v26 }
 0x24d   :  { %v264_v6 = vpop.permute.xlu1 %263 }
 0x24e   :  { %v266_v9 = vadd.f32 %v264_v6, %v257_v4  ;;  %v267_v10 = vadd.f32 %v264_v6, %v258_v63  ;;  %v268_v17 = vadd.f32 %v264_v6, %v259_v0  ;;  %v269_v18 = vadd.f32 %v264_v6, %v260_v5 }
 0x250   :  { %v773_v19 = vmax.f32 %v266_v9, 0.0  ;;  %v775_v1 = vmax.f32 %v267_v10, 0.0  ;;  %v777_v20 = vmax.f32 %v268_v17, 0.0  ;;  %v779_v21 = vmax.f32 %v269_v18, 0.0 }
 0x252   :  { %v278_v22 = vrot.slane %v773_v19, %v684_v7  ;;  %v282_v23 = vrot.slane %v775_v1, %v684_v7  ;;  %v286_v24 = vrot.slane %v777_v20, %v684_v7  ;;  %v290_v25 = vrot.slane %v779_v21, %v684_v7  ;;  %v374_v26 = vpop.permute.xlu1 %373 }
 0x253   :  { %v303_v27 = vrot.slane %v773_v19, %v698_v13  ;;  %v307_v28 = vrot.slane %v775_v1, %v698_v13  ;;  %v311_v29 = vrot.slane %v777_v20, %v698_v13  ;;  %v315_v30 = vrot.slane %v779_v21, %v698_v13 }
 0x254   :  { %v296_v31 = vmul.f32 %v294_v59, %v278_v22  ;;  %v297_v32 = vmul.f32 %v294_v59, %v282_v23  ;;  %v298_v33 = vmul.f32 %v294_v59, %v286_v24  ;;  %v299_v34 = vmul.f32 %v294_v59, %v290_v25 }
 0x255   :  { %v320_v35 = vmul.f32 %v318_v60, %v303_v27  ;;  %v321_v36 = vmul.f32 %v318_v60, %v307_v28  ;;  %v322_v7 = vmul.f32 %v318_v60, %v311_v29  ;;  %v323_v37 = vmul.f32 %v318_v60, %v315_v30 }
 0x256   :  { %v331_v38 = vrot.slane %v773_v19, %v694_v11  ;;  %v335_v39 = vrot.slane %v775_v1, %v694_v11  ;;  %v339_v40 = vrot.slane %v777_v20, %v694_v11  ;;  %v343_v13 = vrot.slane %v779_v21, %v694_v11 }
 0x257   :  { %v324_v41 = vadd.f32 %v320_v35, %v296_v31  ;;  %v325_v42 = vadd.f32 %v321_v36, %v297_v32  ;;  %v326_v43 = vadd.f32 %v322_v7, %v298_v33  ;;  %v327_v44 = vadd.f32 %v323_v37, %v299_v34  ;;  %v402_v45 = vpop.permute.xlu1 %401  ;;  %v486_v36 = vpop.permute.xlu0 %485 }
 0x258   :  { %v348_v46 = vmul.f32 %v346_v61, %v331_v38  ;;  %v349_v47 = vmul.f32 %v346_v61, %v335_v39  ;;  %v350_v48 = vmul.f32 %v346_v61, %v339_v40  ;;  %v351_v49 = vmul.f32 %v346_v61, %v343_v13 }
 0x259   :  { %v359_v50 = vrot.slane %v773_v19, %v702_v15  ;;  %v363_v51 = vrot.slane %v775_v1, %v702_v15  ;;  %v367_v52 = vrot.slane %v777_v20, %v702_v15  ;;  %v371_v11 = vrot.slane %v779_v21, %v702_v15 }
 0x25a   :  { %v352_v53 = vadd.f32 %v348_v46, %v324_v41  ;;  %v353_v3 = vadd.f32 %v349_v47, %v325_v42  ;;  %v354_v2 = vadd.f32 %v350_v48, %v326_v43  ;;  %v355_v54 = vadd.f32 %v351_v49, %v327_v44 }
 0x25b   :  { %v376_v55 = vmul.f32 %v374_v26, %v359_v50  ;;  %v377_v56 = vmul.f32 %v374_v26, %v363_v51  ;;  %v378_v57 = vmul.f32 %v374_v26, %v367_v52  ;;  %v379_v58 = vmul.f32 %v374_v26, %v371_v11 }
 0x25c   :  { %v471_v59 = vrot.slane %v773_v19, %v704_v16  ;;  %v475_v60 = vrot.slane %v775_v1, %v704_v16  ;;  %v479_v61 = vrot.slane %v777_v20, %v704_v16  ;;  %v483_v15 = vrot.slane %v779_v21, %v704_v16  ;;  %v430_v62 = vpop.permute.xlu1 %429 }
 0x25d   :  { %v380_v4 = vadd.f32 %v376_v55, %v352_v53  ;;  %v381_v63 = vadd.f32 %v377_v56, %v353_v3  ;;  %v382_v0 = vadd.f32 %v378_v57, %v354_v2  ;;  %v383_v5 = vadd.f32 %v379_v58, %v355_v54 }
 0x25e   :  { %v387_v6 = vrot.slane %v773_v19, %v686_v8  ;;  %v391_v9 = vrot.slane %v775_v1, %v686_v8  ;;  %v395_v10 = vrot.slane %v777_v20, %v686_v8  ;;  %v399_v17 = vrot.slane %v779_v21, %v686_v8 }
 0x25f   :  { %v415_v16 = vrot.slane %v773_v19, %v700_v14  ;;  %v419_v18 = vrot.slane %v775_v1, %v700_v14  ;;  %v423_v22 = vrot.slane %v777_v20, %v700_v14  ;;  %v427_v23 = vrot.slane %v779_v21, %v700_v14 }
 0x260   :  { %v404_v24 = vmul.f32 %v402_v45, %v387_v6  ;;  %v405_v25 = vmul.f32 %v402_v45, %v391_v9  ;;  %v406_v26 = vmul.f32 %v402_v45, %v395_v10  ;;  %v407_v27 = vmul.f32 %v402_v45, %v399_v17  ;;  %v496_v17 = vld [vmem:[%s868_s5] sm:$0xff]  ;;  %s600_s5 = scalar_lea.vmem %s559_s13, 512 }
 0x261   :  { %v432_v28 = vmul.f32 %v430_v62, %v415_v16  ;;  %v433_v29 = vmul.f32 %v430_v62, %v419_v18  ;;  %v434_v30 = vmul.f32 %v430_v62, %v423_v22  ;;  %v435_v8 = vmul.f32 %v430_v62, %v427_v23  ;;  %v458_v35 = vpop.permute.xlu1 %457  ;;  %v497_v22 = vld [vmem:[%s869_s6] sm:$0xff]  ;;  %p601_p0 = scmp.ne.s32.totalorder %s559_s13, %s600_s5  ;;  %p606_p2 = scmp.lt.s32.totalorder %s600_s5, %s600_s5 }
 0x262   :  { %v408_v31 = vadd.f32 %v404_v24, %v380_v4  ;;  %v409_v32 = vadd.f32 %v405_v25, %v381_v63  ;;  %v410_v33 = vadd.f32 %v406_v26, %v382_v0  ;;  %v411_v34 = vadd.f32 %v407_v27, %v383_v5 }
 0x263   :  { %v443_v7 = vrot.slane %v773_v19, %v696_v12  ;;  %v447_v14 = vrot.slane %v775_v1, %v696_v12  ;;  %v451_v37 = vrot.slane %v777_v20, %v696_v12  ;;  %v455_v38 = vrot.slane %v779_v21, %v696_v12  ;;  %p607_p3 = por %p606_p2, %p605_p1 }
 0x264   :  { %v436_v39 = vadd.f32 %v432_v28, %v408_v31  ;;  %v437_v40 = vadd.f32 %v433_v29, %v409_v32  ;;  %v438_v13 = vadd.f32 %v434_v30, %v410_v33  ;;  %v439_v41 = vadd.f32 %v435_v8, %v411_v34 }
 0x265   :  { %v460_v42 = vmul.f32 %v458_v35, %v443_v7  ;;  %v461_v43 = vmul.f32 %v458_v35, %v447_v14  ;;  %v462_v44 = vmul.f32 %v458_v35, %v451_v37  ;;  %v463_v45 = vmul.f32 %v458_v35, %v455_v38  ;;  %p608_p4 = pnand %p607_p3, %p601_p0 }
 0x266   :  { %v488_v46 = vmul.f32 %v486_v36, %v471_v59  ;;  %v489_v47 = vmul.f32 %v486_v36, %v475_v60  ;;  %v490_v19 = vmul.f32 %v486_v36, %v479_v61  ;;  %v491_v48 = vmul.f32 %v486_v36, %v483_v15 }
 0x267   :  { %v464_v49 = vadd.f32 %v460_v42, %v436_v39  ;;  %v465_v1 = vadd.f32 %v461_v43, %v437_v40  ;;  %v466_v50 = vadd.f32 %v462_v44, %v438_v13  ;;  %v467_v51 = vadd.f32 %v463_v45, %v439_v41 }
 0x269   :  { %v494_v20 = vadd.f32 %v490_v19, %v466_v50  ;;  %v495_v52 = vadd.f32 %v491_v48, %v467_v51  ;;  %v492_v11 = vadd.f32 %v488_v46, %v464_v49  ;;  %v493_v12 = vadd.f32 %v489_v47, %v465_v1 }
 0x26b   :  { %v501_v21 = vadd.f32 %v495_v52, %v494_v20  ;;  %v498_v53 = vadd.f32 %v493_v12, %v492_v11 }
 0x26d   :  { %502 = vadd.xlane.f32.xlu0 %v501_v21  ;;  %499 = vadd.xlane.f32.xlu1 %v498_v53 }
 0x2fa   :  { %v503_v3 = vpop.xlane.xlu0 %502  ;;  %v500_v2 = vpop.xlane.xlu1 %499 }
 0x2fb   :  { %v504_v54 = vadd.f32 %v503_v3, %v500_v2 }
 0x2fd   :  { %v505_v55 = vmul.f32 0.001953125, %v504_v54 }
 0x2ff   :  { %v508_v56 = vsub.f32 %v494_v20, %v505_v55  ;;  %v509_v57 = vsub.f32 %v495_v52, %v505_v55  ;;  %v506_v58 = vsub.f32 %v492_v11, %v505_v55  ;;  %v507_v59 = vsub.f32 %v493_v12, %v505_v55 }
 0x301   :  { %v512_v60 = vmul.f32 %v508_v56, %v508_v56  ;;  %v513_v61 = vmul.f32 %v509_v57, %v509_v57  ;;  %v510_v15 = vmul.f32 %v506_v58, %v506_v58  ;;  %v511_v62 = vmul.f32 %v507_v59, %v507_v59 }
 0x303   :  { %v517_v4 = vadd.f32 %v513_v61, %v512_v60  ;;  %v514_v63 = vadd.f32 %v511_v62, %v510_v15 }
 0x305   :  { %518 = vadd.xlane.f32.xlu0 %v517_v4  ;;  %515 = vadd.xlane.f32.xlu1 %v514_v63 }
 0x392   :  { %v519_v0 = vpop.xlane.xlu0 %518  ;;  %v516_v5 = vpop.xlane.xlu1 %515 }
 0x393   :  { %v520_v6 = vadd.f32 %v519_v0, %v516_v5 }
 0x395   :  { %v521_v9 = vmul.f32 0.001953125, %v520_v6 }
 0x397   :  { %v522_v10 = vadd.f32 1e-05, %v521_v9 }
 0x399   :  { %598 = vrsqrt.f32 %v522_v10 }
 0x3a3   :  { %v599_v16 = vpop.eup %598 }
 0x3a4   :  { %v524_v18 = vmul.f32 %v599_v16, %v496_v17 }
 0x3a6   :  { %529 = vperm.xlu1 %594, %v524_v18   ;;  %v525_v23 = vmul.f32 %v524_v18, %v505_v55 }
 0x3a8   :  { %v526_v24 = vsub.f32 %v497_v22, %v525_v23 }
 0x3aa   :  { %538 = vperm.xlu0 %595, %v526_v24  }
 0x425   :  { %v530_v25 = vpop.permute.xlu1 %529 }
 0x426   :  { %v532_v26 = vmul.f32 %v530_v25, %v492_v11  ;;  %v533_v27 = vmul.f32 %v530_v25, %v493_v12  ;;  %v534_v28 = vmul.f32 %v530_v25, %v494_v20  ;;  %v535_v29 = vmul.f32 %v530_v25, %v495_v52 }
 0x429   :  { %v539_v30 = vpop.permute.xlu0 %538 }
 0x42a   :  { %v541_v8 = vadd.f32 %v539_v30, %v532_v26  ;;  %v542_v31 = vadd.f32 %v539_v30, %v533_v27  ;;  %v543_v32 = vadd.f32 %v539_v30, %v534_v28  ;;  %v544_v33 = vadd.f32 %v539_v30, %v535_v29 }
 0x42c   :  { %v545_v34 = vmax.f32 %v541_v8, 0.0  ;;  %v546_v35 = vmax.f32 %v542_v31, 0.0  ;;  %v547_v36 = vmax.f32 %v543_v32, 0.0  ;;  %v548_v7 = vmax.f32 %v544_v33, 0.0 }
 0x42e   :  { %549 = vst [vmem:[#allocation2] sm:$0xff] %v545_v34  ;;  %550 = vst [vmem:[#allocation2 + $0x8] sm:$0xff] %v546_v35 }
 0x42f   :  { %551 = vst [vmem:[#allocation2 + $0x10] sm:$0xff] %v547_v36  ;;  %552 = vst [vmem:[#allocation2 + $0x18] sm:$0xff] %v548_v7 }
 0x430   :  { %611 = shalt.err (!%p608_p4)
}
 0x431   :  { %s612_s15 = scalar_lea.hbm %s870_s7, 512 }
 0x432   :  { %p613_p5 = scmp.ne.s32.totalorder %s870_s7, %s612_s15  ;;  %p616_p6 = scmp.lt.u32.totalorder %s612_s15, %s870_s7 }
 0x434   :  { %p618_p7 = pnand %p616_p6, %p613_p5 }
 0x436   :  { %621 = shalt.err (!%p618_p7)
}
 0x437   :  { %s633_s20 = smov 256   ;;  %s634_s21 = smov 16  }
 0x438   :  { %564 = dma.vmem_to_hbm [thread:$0]  %s559_s13, 512, %s870_s7, [#allocation3], %s633_s20, %s633_s20, %s634_s21  }
 0x439   :  { %622 = dma.done.wait [#allocation3], 512  }
 0x43a   :  { %623 = vsyncadd [#allocation3], 4294966784 }
 0x43b   :  { %568 = vsyncpa [#allocation3], 1 }

</bundles_post_ra>
